<compile_context>
chip_gen: v6e
topology: v6e:2x2x1
jax: 0.10.0
libtpu: 0.0.40
codegen_flags: <defaults>
</compile_context>

<pallas_src>
import functools

import jax
import jax.numpy as jnp
from jax import lax
from jax.experimental import pallas as pl
from jax.experimental.pallas import tpu as pltpu


def _round_up(x, m):
    return ((x + m - 1) // m) * m


def _liniaf_kernel(L_ref, z_ref, out_ref, *, z_dim):
    # L_ref:  (block_B, z_dim, z_dim) in VMEM
    # z_ref:  (block_B, z_dim)        in VMEM
    # out_ref:(block_B, z_dim)        in VMEM
    Lm = L_ref[...].astype(jnp.float32)                 # (bB, D, D)
    z = z_ref[...].astype(jnp.float32)                  # (bB, D)

    row = lax.broadcasted_iota(jnp.int32, (z_dim, z_dim), 0)
    col = lax.broadcasted_iota(jnp.int32, (z_dim, z_dim), 1)
    strict_lower = (col < row)[None, :, :]              # (1, D, D)

    # (strict_lower_mask * L + I) @ z  ==  sum_j mask*L[b,i,j]*z[b,j] + z[b,i]
    masked = jnp.where(strict_lower, Lm * z[:, None, :], 0.0)   # (bB, D, D)
    z_new = z + jnp.sum(masked, axis=-1)                        # (bB, D)
    out_ref[...] = z_new.astype(out_ref.dtype)


def lin_iaf(L, z, z_dim, block_B=512):
    """L: (B, z_dim*z_dim), z: (B, z_dim) -> (B, z_dim) float32."""
    B = L.shape[0]
    assert L.shape == (B, z_dim * z_dim)
    assert z.shape == (B, z_dim)

    # Glue: reshape flat L into a batch of square matrices.
    L_matrix = L.reshape(B, z_dim, z_dim)

    # Pick a batch block that is a multiple of 8 (sublane) and pad the batch
    # so the grid divides evenly (padded rows compute zeros, sliced off below).
    block_B = min(block_B, _round_up(B, 8))
    Bp = _round_up(B, block_B)
    if Bp != B:
        pad = Bp - B
        L_matrix = jnp.pad(L_matrix, ((0, pad), (0, 0), (0, 0)))
        z = jnp.pad(z, ((0, pad), (0, 0)))

    grid = (Bp // block_B,)
    kernel = functools.partial(_liniaf_kernel, z_dim=z_dim)

    cost = pl.CostEstimate(
        flops=4 * Bp * z_dim * z_dim,
        transcendentals=0,
        bytes_accessed=4 * Bp * z_dim * z_dim + 2 * 4 * Bp * z_dim,
    )

    out = pl.pallas_call(
        kernel,
        out_shape=jax.ShapeDtypeStruct((Bp, z_dim), jnp.float32),
        grid=grid,
        in_specs=[
            pl.BlockSpec((block_B, z_dim, z_dim), lambda b: (b, 0, 0)),
            pl.BlockSpec((block_B, z_dim), lambda b: (b, 0)),
        ],
        out_specs=pl.BlockSpec((block_B, z_dim), lambda b: (b, 0)),
        compiler_params=pltpu.CompilerParams(
            dimension_semantics=("parallel",),
            vmem_limit_bytes=48 * 1024 * 1024,
        ),
        cost_estimate=cost,
    )(L_matrix, z)

    return out[:B] if Bp != B else out


def lin_iaf_ref(L, z, z_dim):
    """Pure-JAX reference matching the PyTorch module."""
    B = L.shape[0]
    Lm = L.reshape(B, z_dim, z_dim)
    mask = jnp.tril(jnp.ones((z_dim, z_dim), jnp.float32), k=-1)
    eye = jnp.eye(z_dim, dtype=jnp.float32)
    LT = Lm * mask[None] + eye[None]
    return jnp.einsum("bij,bj->bi", LT, z)


if __name__ == "__main__":
    B, z_dim = 4, 32
    key = jax.random.PRNGKey(0)
    kL, kz = jax.random.split(key)
    L = jax.random.normal(kL, (B, z_dim * z_dim), dtype=jnp.float32)
    z = jax.random.normal(kz, (B, z_dim), dtype=jnp.float32)

    out = lin_iaf(L, z, z_dim)
    out = jax.block_until_ready(out)

    ref = lin_iaf_ref(L, z, z_dim)
    assert out.shape == (B, z_dim)
    assert jnp.allclose(out, ref, atol=1e-5, rtol=1e-5), "mismatch vs reference"

    # Also exercise a tail block (B not a multiple of block_B) at a larger size.
    B2 = 1000
    kL2, kz2 = jax.random.split(jax.random.PRNGKey(1))
    L2 = jax.random.normal(kL2, (B2, z_dim * z_dim), dtype=jnp.float32)
    z2 = jax.random.normal(kz2, (B2, z_dim), dtype=jnp.float32)
    out2 = jax.block_until_ready(lin_iaf(L2, z2, z_dim))
    ref2 = lin_iaf_ref(L2, z2, z_dim)
    assert jnp.allclose(out2, ref2, atol=1e-4, rtol=1e-4), "mismatch (tail block)"

    print("KERNEL_OK")
</pallas_src>

<mosaic_0001>
module attributes {stable_mosaic.version = 11 : i64} {
  func.func @_liniaf_kernel(%arg0: i32, %arg1: memref<8x32x32xf32, #tpu.memory_space<vmem>>, %arg2: memref<8x32xf32, #tpu.memory_space<vmem>>, %arg3: memref<8x32xf32, #tpu.memory_space<vmem>>) attributes {dimension_semantics = [#tpu.dimension_semantics<parallel>], iteration_bounds = array<i64: 1>, scalar_prefetch = 0 : i64, scratch_operands = 0 : i64, tpu.core_type = #tpu.core_type<tc>, window_params = [{transform_indices = @transform_0, window_bounds = array<i64: 8, 32, 32>}, {transform_indices = @transform_1, window_bounds = array<i64: 8, 32>}, {transform_indices = @transform_2, window_bounds = array<i64: 8, 32>}]} {
    %c0 = arith.constant 0 : index
    %c0_0 = arith.constant 0 : index
    %c0_1 = arith.constant 0 : index
    %0 = vector.load %arg1[%c0, %c0_0, %c0_1] : memref<8x32x32xf32, #tpu.memory_space<vmem>>, vector<8x32x32xf32>
    %c0_2 = arith.constant 0 : index
    %c0_3 = arith.constant 0 : index
    %1 = vector.load %arg2[%c0_2, %c0_3] : memref<8x32xf32, #tpu.memory_space<vmem>>, vector<8x32xf32>
    %2 = tpu.iota {dimensions = array<i32: 0>} : vector<32x32xi32>
    %3 = tpu.iota {dimensions = array<i32: 1>} : vector<32x32xi32>
    %4 = arith.cmpi slt, %3, %2 : vector<32x32xi32>
    %5 = vector.shape_cast %4 : vector<32x32xi1> to vector<1x32x32xi1>
    %6 = vector.shape_cast %1 : vector<8x32xf32> to vector<8x1x32xf32>
    %7 = vector.broadcast %6 : vector<8x1x32xf32> to vector<8x32x32xf32>
    %8 = arith.mulf %0, %7 : vector<8x32x32xf32>
    %cst = arith.constant 0.000000e+00 : f32
    %9 = vector.shape_cast %5 : vector<1x32x32xi1> to vector<1x32x32xi1>
    %10 = vector.broadcast %9 : vector<1x32x32xi1> to vector<8x32x32xi1>
    %11 = vector.broadcast %cst : f32 to vector<8x32x32xf32>
    %12 = arith.select %10, %8, %11 : vector<8x32x32xi1>, vector<8x32x32xf32>
    %cst_4 = arith.constant dense<0.000000e+00> : vector<8x32xf32>
    %13 = vector.multi_reduction <add>, %12, %cst_4 [2] : vector<8x32x32xf32> to vector<8x32xf32>
    %14 = arith.addf %1, %13 : vector<8x32xf32>
    %c0_5 = arith.constant 0 : index
    %c0_6 = arith.constant 0 : index
    %15 = vector.load %arg3[%c0_5, %c0_6] : memref<8x32xf32, #tpu.memory_space<vmem>>, vector<8x32xf32>
    tpu.vector_store %arg3[%c0_5, %c0_6], %14 {strides = array<i32>} : memref<8x32xf32, #tpu.memory_space<vmem>>, vector<8x32xf32>,
    return
  }
  func.func @transform_0(%arg0: i32) -> (i32, i32, i32) {
    %c0_i32 = arith.constant 0 : i32
    %c0_i32_0 = arith.constant 0 : i32
    %c0_i32_1 = arith.constant 0 : i32
    return %arg0, %c0_i32, %c0_i32_0 : i32, i32, i32
  }
  func.func @transform_1(%arg0: i32) -> (i32, i32) {
    %c0_i32 = arith.constant 0 : i32
    %c0_i32_0 = arith.constant 0 : i32
    return %arg0, %c0_i32 : i32, i32
  }
  func.func @transform_2(%arg0: i32) -> (i32, i32) {
    %c0_i32 = arith.constant 0 : i32
    %c0_i32_0 = arith.constant 0 : i32
    return %arg0, %c0_i32 : i32, i32
  }
}

</mosaic_0001>

<bundles_post_ra>
// kernel: tpu_custom_call.1
= control target key start
LH: loop header
LB: loop body
LE: loop exit
PB: predicated region body
PF: predicated region fallthrough
CT: control target
= control target key end

     0   :  { %7 = vsyncpa [#allocation3], 0  ;;  %s895_s0 = inlined_call_operand.hbm [shape: f32[8,32,32], index: 0, kind: input, shape index: {}]   ;;  %s896_s1 = inlined_call_operand.hbm [shape: f32[8,32], index: 1, kind: input, shape index: {}]   ;;  %s897_s2 = inlined_call_operand.hbm [shape: f32[8,32], index: 2, kind: output, shape index: {}]  }
   0x1   :  { %8 = vsyncpa [#allocation6], 0 }
   0x2   :  { %9 = vsyncpa [#allocation4], 0  ;;  %s637_s9 = smov [#allocation2]  }
   0x3   :  { %s15_s10 = sshll.u32 %s637_s9, 4  ;;  %s16_s10 = int_to_ptr.vmem [resolvable:$true] %s15_s10 }
   0x4   :  { %s579_s11 = scalar_lea.vmem %s16_s10, 4096  ;;  %p584_p1 = scmp.lt.s32.totalorder %s16_s10, %s16_s10 }
   0x5   :  { %p580_p0 = scmp.ne.s32.totalorder %s16_s10, %s579_s11  ;;  %p585_p2 = scmp.lt.s32.totalorder %s579_s11, %s579_s11 }
   0x7   :  { %p586_p3 = por %p585_p2, %p584_p1 }
   0x9   :  { %p587_p4 = pnand %p586_p3, %p580_p0 }
   0xb   :  { %590 = shalt.err (!%p587_p4)
}
   0xc   :  { %s638_s12 = smov 128   ;;  %s639_s13 = smov 8  }
   0xd   :  { %21 = dma.hbm_to_vmem [thread:$0]  %s895_s0, 4096, %s16_s10, [#allocation3], %s638_s12, %s638_s12, %s639_s13  }
   0xe   :  { %s640_s16 = smov [#allocation5]  }
   0xf   :  { %s28_s17 = sshll.u32 %s640_s16, 4  ;;  %s29_s17 = int_to_ptr.vmem [resolvable:$true] %s28_s17 }
  0x10   :  { %s599_s18 = scalar_lea.vmem %s29_s17, 128  ;;  %p604_p6 = scmp.lt.s32.totalorder %s29_s17, %s29_s17 }
  0x11   :  { %p600_p5 = scmp.ne.s32.totalorder %s29_s17, %s599_s18  ;;  %p605_p7 = scmp.lt.s32.totalorder %s599_s18, %s599_s18 }
  0x13   :  { %p606_p8 = por %p605_p7, %p604_p6 }
  0x15   :  { %p607_p9 = pnand %p606_p8, %p600_p5 }
  0x17   :  { %610 = shalt.err (!%p607_p9)
}
  0x18   :  { %31 = dma.hbm_to_vmem [thread:$0]  %s896_s1, 128, %s29_s17, [#allocation6]  }
  0x19   :  { %631 = dma.done.wait [#allocation3], 4096  }
  0x1a   :  { %632 = vsyncadd [#allocation3], 4294963200 }
  0x1b   :  { %633 = dma.done.wait [#allocation6], 128  }
  0x1c   :  { %634 = vsyncadd [#allocation6], 4294967168  ;;  %v71_v0 = vlaneseq  ;;  %v641_v1 = vmov 1966171168   ;;  %v675_v8 = vld [vmem:[#allocation5] sm:$0xff]  ;;  %v39_v15 = vld [vmem:[#allocation2 + $0x8] sm:$0xff] }
  0x1d   :  { %v85_v2 = vunpack.c.l.s4 %v641_v1  ;;  %v38_v14 = vld [vmem:[#allocation2] sm:$0xff]  ;;  %v40_v18 = vld [vmem:[#allocation2 + $0x10] sm:$0xff]  ;;  %vm244_vm1 = vcmask 261120   ;;  %v43_v22 = vld [vmem:[#allocation2 + $0x28] sm:$0xff]  ;;  %v83_v53 = vcombine.high %v675_v8, %v675_v8  ;;  %vm382_vm5 = vcmask 130112   ;;  %s642_s0 = smov [#allocation7]  }
  0x1e   :  { %v664_v3 = vshrl.u32 %v71_v0, 7  ;;  %v666_v4 = vand.u32 127, %v71_v0  ;;  %v42_v20 = vld [vmem:[#allocation2 + $0x20] sm:$0xff]  ;;  %v44_v29 = vld [vmem:[#allocation2 + $0x30] sm:$0xff]  ;;  %v41_v36 = vld [vmem:[#allocation2 + $0x18] sm:$0xff]  ;;  %vm389_vm6 = vcmask 195712  }
  0x1f   :  { %v86_v5 = vunpack.c.0.s8 %v85_v2  ;;  %v47_v44 = vld [vmem:[#allocation2 + $0x48] sm:$0xff]  ;;  %v46_v49 = vld [vmem:[#allocation2 + $0x40] sm:$0xff]  ;;  %v45_v55 = vld [vmem:[#allocation2 + $0x38] sm:$0xff]  ;;  %vm396_vm7 = vcmask 261312   ;;  %vm531_vm8 = vcmask 1041409   ;;  %vm533_vm9 = vcmask 1042434  }
  0x20   :  { %v673_v7 = vsub.s32 %v666_v4, %v664_v3  ;;  %v680_v10 = vsub.s32 0, %v664_v3  ;;  %v73_v11 = vadd.s32 8, %v664_v3  ;;  %vm688_vm0 = vcmp.lt.s32.totalorder %v666_v4, %v664_v3  ;;  %v48_v59 = vld [vmem:[#allocation2 + $0x50] sm:$0xff]  ;;  %v50_v1 = vld [vmem:[#allocation2 + $0x60] sm:$0xff]  ;;  %s554_s1 = sshll.u32 %s642_s0, 4  ;;  %s555_s1 = int_to_ptr.vmem [resolvable:$true] %s554_s1 }
  0x21   :  { %v669_v6 = vsub.s32 %v86_v5, %v664_v3  ;;  %v74_v23 = vadd.s32 16, %v664_v3  ;;  %v75_v37 = vadd.s32 24, %v664_v3  ;;  %vm535_vm10 = vcmask 1043459   ;;  %s611_s21 = scalar_lea.vmem %s555_s1, 128  ;;  %p616_p11 = scmp.lt.s32.totalorder %s555_s1, %s555_s1 }
  0x22   :  { %vm693_vm2 = vcmp.lt.s32.totalorder %v666_v4, %v73_v11  ;;  %v51_v11 = vld [vmem:[#allocation2 + $0x68] sm:$0xff]  ;;  %vm537_vm11 = vcmask 1044484   ;;  %vm539_vm12 = vcmask 1045509   ;;  %vm541_vm13 = vcmask 1046534   ;;  %p612_p10 = scmp.ne.s32.totalorder %s555_s1, %s611_s21  ;;  %p617_p12 = scmp.lt.s32.totalorder %s611_s21, %s611_s21 }
  0x23   :  { %v90_v9 = vrot.slane %v675_v8, %v669_v6  ;;  %vm705_vm3 = vcmp.lt.s32.totalorder %v666_v4, %v74_v23  ;;  %vm721_vm4 = vcmp.lt.s32.totalorder %v666_v4, %v75_v37  ;;  %v97_v63 = vrot.slane %v83_v53, %v669_v6 }
  0x24   :  { %vm543_vm14 = vcmask 1047559   ;;  %p618_p13 = por %p617_p12, %p616_p11 }
  0x25   :  { %v106_v12 = vrot.slane %v90_v9, %v669_v6  ;;  %v98_v13 = vcombine.high %v90_v9, %v90_v9  ;;  %v99_v23 = vcombine.high %v97_v63, %v97_v63 }
  0x26   :  { %p619_p0 = pnand %p618_p13, %p612_p10 }
  0x27   :  { %v135_v16 = vrot.slane %v106_v12, %v680_v10  ;;  %v120_v17 = vrot.slane %v98_v13, %v669_v6  ;;  %v128_v27 = vcombine.high %v106_v12, %v106_v12  ;;  %v127_v37 = vrot.slane %v99_v23, %v669_v6 }
  0x29   :  { %v172_v24 = vmul.f32 %v135_v16, %v38_v14  ;;  %v139_v25 = vrot.slane %v120_v17, %v680_v10  ;;  %v173_v26 = vmul.f32 %v135_v16, %v39_v15  ;;  %v174_v28 = vmul.f32 %v135_v16, %v40_v18 }
  0x2a   :  { %v143_v41 = vrot.slane %v128_v27, %v680_v10  ;;  %v175_v46 = vmul.f32 %v135_v16, %v41_v36  ;;  %v130_v52 = vcombine.high %v120_v17, %v120_v17  ;;  %v744_v14 = vrot.slane %v97_v63, %v669_v6  ;;  %v49_v16 = vld [vmem:[#allocation2 + $0x58] sm:$0xff] }
  0x2b   :  { %v212_v30 = vsel %vm688_vm0, %v172_v24, 0.0  ;;  %v176_v31 = vmul.f32 %v139_v25, %v42_v20  ;;  %v213_v32 = vsel %vm693_vm2, %v173_v26, 0.0  ;;  %v177_v33 = vmul.f32 %v139_v25, %v43_v22  ;;  %v52_v22 = vld [vmem:[#allocation2 + $0x70] sm:$0xff] }
  0x2c   :  { %v245_v34 = vsel %vm244_vm1, %v212_v30, 0.0  ;;  %v178_v40 = vmul.f32 %v139_v25, %v44_v29  ;;  %v248_v43 = vsel %vm244_vm1, %v213_v32, 0.0  ;;  %v214_v45 = vsel %vm705_vm3, %v174_v28, 0.0  ;;  %v54_v29 = vld [vmem:[#allocation2 + $0x80] sm:$0xff] }
  0x2d   :  { %246 = vadd.xlane.f32.xlu0 %v245_v34  ;;  %v216_v38 = vsel %vm688_vm0, %v176_v31, 0.0  ;;  %v217_v39 = vsel %vm693_vm2, %v177_v33, 0.0  ;;  %v181_v51 = vmul.f32 %v143_v41, %v47_v44  ;;  %v251_v54 = vsel %vm244_vm1, %v214_v45, 0.0  ;;  %v55_v33 = vld [vmem:[#allocation2 + $0x88] sm:$0xff]  ;;  %v56_v45 = vld [vmem:[#allocation2 + $0x90] sm:$0xff] }
  0x2e   :  { %v257_v42 = vsel %vm244_vm1, %v216_v38, 0.0  ;;  %v260_v47 = vsel %vm244_vm1, %v217_v39, 0.0  ;;  %v218_v50 = vsel %vm705_vm3, %v178_v40, 0.0  ;;  %v215_v56 = vsel %vm721_vm4, %v175_v46, 0.0  ;;  %v53_v40 = vld [vmem:[#allocation2 + $0x78] sm:$0xff] }
  0x2f   :  { %258 = vadd.xlane.f32.xlu1 %v257_v42  ;;  %v180_v57 = vmul.f32 %v143_v41, %v46_v49  ;;  %v263_v58 = vsel %vm244_vm1, %v218_v50, 0.0  ;;  %v221_v60 = vsel %vm693_vm2, %v181_v51, 0.0  ;;  %v179_v61 = vmul.f32 %v139_v25, %v45_v55 }
  0x30   :  { %v147_v62 = vrot.slane %v130_v52, %v680_v10  ;;  %v254_v0 = vsel %vm244_vm1, %v215_v56, 0.0  ;;  %v182_v5 = vmul.f32 %v143_v41, %v48_v59  ;;  %v272_v9 = vsel %vm244_vm1, %v221_v60, 0.0  ;;  %v58_v52 = vld [vmem:[#allocation2 + $0xa0] sm:$0xff] }
  0x31   :  { %249 = vadd.xlane.f32.xlu0 %v248_v43  ;;  %v220_v2 = vsel %vm688_vm0, %v180_v57, 0.0  ;;  %v219_v12 = vsel %vm721_vm4, %v179_v61, 0.0  ;;  %v183_v25 = vmul.f32 %v143_v41, %v49_v16  ;;  %v151_v26 = vrot.slane %v744_v14, %v680_v10  ;;  %v59_v57 = vld [vmem:[#allocation2 + $0xa8] sm:$0xff]  ;;  %v57_v61 = vld [vmem:[#allocation2 + $0x98] sm:$0xff] }
  0x32   :  { %v184_v13 = vmul.f32 %v147_v62, %v50_v1  ;;  %v269_v15 = vsel %vm244_vm1, %v220_v2, 0.0  ;;  %v222_v17 = vsel %vm705_vm3, %v182_v5, 0.0  ;;  %v185_v18 = vmul.f32 %v147_v62, %v51_v11  ;;  %v62_v11 = vld [vmem:[#allocation2 + $0xc0] sm:$0xff] }
  0x33   :  { %261 = vadd.xlane.f32.xlu1 %v260_v47  ;;  %v266_v20 = vsel %vm244_vm1, %v219_v12, 0.0  ;;  %v377_v27 = vadd.s32 4294967288, %v666_v4  ;;  %v275_v28 = vsel %vm244_vm1, %v222_v17, 0.0  ;;  %v186_v31 = vmul.f32 %v147_v62, %v52_v22  ;;  %v61_v22 = vld [vmem:[#allocation2 + $0xb8] sm:$0xff] }
  0x34   :  { %v224_v24 = vsel %vm688_vm0, %v184_v13, 0.0  ;;  %v225_v30 = vsel %vm693_vm2, %v185_v18, 0.0  ;;  %v223_v34 = vsel %vm721_vm4, %v183_v25, 0.0  ;;  %v188_v36 = vmul.f32 %v151_v26, %v54_v29 }
  0x35   :  { %252 = vadd.xlane.f32.xlu0 %v251_v54  ;;  %v281_v32 = vsel %vm244_vm1, %v224_v24, 0.0  ;;  %v763_v38 = vsub.s32 %v377_v27, %v664_v3  ;;  %v284_v39 = vsel %vm244_vm1, %v225_v30, 0.0  ;;  %v384_v41 = vadd.s32 4294967280, %v666_v4 }
  0x36   :  { %v226_v42 = vsel %vm705_vm3, %v186_v31, 0.0  ;;  %v189_v43 = vmul.f32 %v151_v26, %v55_v33  ;;  %v278_v44 = vsel %vm244_vm1, %v223_v34, 0.0  ;;  %v228_v6 = vsel %vm688_vm0, %v188_v36, 0.0  ;;  %v66_v31 = vld [vmem:[#allocation2 + $0xe0] sm:$0xff]  ;;  %v67_v36 = vld [vmem:[#allocation2 + $0xe8] sm:$0xff] }
  0x37   :  { %264 = vadd.xlane.f32.xlu1 %v263_v58  ;;  %v771_v46 = vsub.s32 %v384_v41, %v664_v3  ;;  %v187_v47 = vmul.f32 %v147_v62, %v53_v40  ;;  %v155_v49 = vrot.slane %v127_v37, %v680_v10  ;;  %v391_v50 = vadd.s32 4294967272, %v666_v4  ;;  %v65_v41 = vld [vmem:[#allocation2 + $0xd8] sm:$0xff] }
  0x38   :  { %v287_v51 = vsel %vm244_vm1, %v226_v42, 0.0  ;;  %v229_v53 = vsel %vm693_vm2, %v189_v43, 0.0  ;;  %v190_v54 = vmul.f32 %v151_v26, %v56_v45  ;;  %v293_v56 = vsel %vm244_vm1, %v228_v6, 0.0 }
  0x39   :  { %255 = vadd.xlane.f32.xlu0 %v254_v0  ;;  %v781_v55 = vsub.s32 %v391_v50, %v664_v3  ;;  %v227_v58 = vsel %vm721_vm4, %v187_v47, 0.0  ;;  %v192_v59 = vmul.f32 %v155_v49, %v58_v52  ;;  %v129_v4 = vcombine.high %v744_v14, %v744_v14  ;;  %v60_v0 = vld [vmem:[#allocation2 + $0xb0] sm:$0xff] }
  0x3a   :  { %v296_v60 = vsel %vm244_vm1, %v229_v53, 0.0  ;;  %v230_v62 = vsel %vm705_vm3, %v190_v54, 0.0  ;;  %v193_v3 = vmul.f32 %v155_v49, %v59_v57  ;;  %v290_v63 = vsel %vm244_vm1, %v227_v58, 0.0 }
  0x3b   :  { %273 = vadd.xlane.f32.xlu1 %v272_v9  ;;  %v232_v1 = vsel %vm688_vm0, %v192_v59, 0.0  ;;  %v191_v2 = vmul.f32 %v151_v26, %v57_v61  ;;  %v159_v5 = vrot.slane %v129_v4, %v680_v10  ;;  %v299_v9 = vsel %vm244_vm1, %v230_v62, 0.0  ;;  %v64_v26 = vld [vmem:[#allocation2 + $0xd0] sm:$0xff] }
  0x3c   :  { %v233_v12 = vsel %vm693_vm2, %v193_v3, 0.0  ;;  %v194_v13 = vmul.f32 %v155_v49, %v60_v0  ;;  %v305_v14 = vsel %vm244_vm1, %v232_v1, 0.0  ;;  %v131_v18 = vcombine.high %v127_v37, %v127_v37 }
  0x3d   :  { %270 = vadd.xlane.f32.xlu0 %v269_v15  ;;  %v63_v15 = vld [vmem:[#allocation2 + $0xc8] sm:$0xff]  ;;  %v231_v16 = vsel %vm721_vm4, %v191_v2, 0.0  ;;  %v196_v17 = vmul.f32 %v159_v5, %v62_v11  ;;  %v198_v33 = vmul.f32 %v159_v5, %v64_v26  ;;  %v199_v6 = vmul.f32 %v159_v5, %v65_v41 }
  0x3e   :  { %v234_v23 = vsel %vm705_vm3, %v194_v13, 0.0  ;;  %v197_v24 = vmul.f32 %v159_v5, %v63_v15  ;;  %v302_v25 = vsel %vm244_vm1, %v231_v16, 0.0  ;;  %v163_v29 = vrot.slane %v131_v18, %v680_v10 }
  0x3f   :  { %267 = vadd.xlane.f32.xlu1 %v266_v20  ;;  %v308_v20 = vsel %vm244_vm1, %v233_v12, 0.0  ;;  %v236_v27 = vsel %vm688_vm0, %v196_v17, 0.0  ;;  %v311_v30 = vsel %vm244_vm1, %v234_v23, 0.0  ;;  %v238_v10 = vsel %vm705_vm3, %v198_v33, 0.0 }
  0x40   :  { %v317_v34 = vsel %vm244_vm1, %v236_v27, 0.0  ;;  %v201_v42 = vmul.f32 %v163_v29, %v67_v36  ;;  %v323_v47 = vsel %vm244_vm1, %v238_v10, 0.0  ;;  %v239_v53 = vsel %vm721_vm4, %v199_v6, 0.0 }
  0x41   :  { %276 = vadd.xlane.f32.xlu0 %v275_v28  ;;  %v195_v28 = vmul.f32 %v155_v49, %v61_v22  ;;  %v69_v49 = vld [vmem:[#allocation2 + $0xf8] sm:$0xff]  ;;  %v326_v57 = vsel %vm244_vm1, %v239_v53, 0.0 }
  0x42   :  { %v241_v50 = vsel %vm693_vm2, %v201_v42, 0.0  ;;  %v203_v54 = vmul.f32 %v163_v29, %v69_v49 }
  0x43   :  { %282 = vadd.xlane.f32.xlu1 %v281_v32  ;;  %v237_v32 = vsel %vm693_vm2, %v197_v24, 0.0  ;;  %v235_v37 = vsel %vm721_vm4, %v195_v28, 0.0 }
  0x44   :  { %v320_v40 = vsel %vm244_vm1, %v237_v32, 0.0  ;;  %v314_v43 = vsel %vm244_vm1, %v235_v37, 0.0  ;;  %v243_v21 = vsel %vm721_vm4, %v203_v54, 0.0 }
  0x45   :  { %285 = vadd.xlane.f32.xlu0 %v284_v39  ;;  %v200_v39 = vmul.f32 %v163_v29, %v66_v31  ;;  %v338_v59 = vsel %vm244_vm1, %v243_v21, 0.0 }
  0x47   :  { %279 = vadd.xlane.f32.xlu1 %v278_v44  ;;  %v68_v44 = vld [vmem:[#allocation2 + $0xf0] sm:$0xff]  ;;  %v240_v45 = vsel %vm688_vm0, %v200_v39, 0.0 }
  0x48   :  { %v329_v52 = vsel %vm244_vm1, %v240_v45, 0.0 }
  0x49   :  { %288 = vadd.xlane.f32.xlu0 %v287_v51  ;;  %v202_v51 = vmul.f32 %v163_v29, %v68_v44 }
  0x4b   :  { %294 = vadd.xlane.f32.xlu1 %v293_v56  ;;  %v332_v56 = vsel %vm244_vm1, %v241_v50, 0.0  ;;  %v242_v19 = vsel %vm705_vm3, %v202_v51, 0.0 }
  0x4c   :  { %v335_v58 = vsel %vm244_vm1, %v242_v19, 0.0 }
  0x4d   :  { %297 = vadd.xlane.f32.xlu0 %v296_v60 }
  0x4f   :  { %291 = vadd.xlane.f32.xlu1 %v290_v63 }
  0x51   :  { %300 = vadd.xlane.f32.xlu0 %v299_v9 }
  0x53   :  { %306 = vadd.xlane.f32.xlu1 %v305_v14 }
  0x55   :  { %309 = vadd.xlane.f32.xlu0 %v308_v20 }
  0x57   :  { %303 = vadd.xlane.f32.xlu1 %v302_v25 }
  0x59   :  { %312 = vadd.xlane.f32.xlu0 %v311_v30 }
  0x5b   :  { %318 = vadd.xlane.f32.xlu1 %v317_v34 }
  0x5d   :  { %321 = vadd.xlane.f32.xlu0 %v320_v40 }
  0x5f   :  { %315 = vadd.xlane.f32.xlu1 %v314_v43 }
  0x61   :  { %324 = vadd.xlane.f32.xlu0 %v323_v47 }
  0x63   :  { %330 = vadd.xlane.f32.xlu1 %v329_v52 }
  0x65   :  { %333 = vadd.xlane.f32.xlu0 %v332_v56 }
  0x67   :  { %327 = vadd.xlane.f32.xlu1 %v326_v57 }
  0x69   :  { %336 = vadd.xlane.f32.xlu0 %v335_v58 }
  0x6b   :  { %339 = vadd.xlane.f32.xlu1 %v338_v59 }
  0xb6   :  { %v247_v4 = vpop.xlane.xlu0 %246 }
  0xb7   :  { %v376_v35 = vrot.slane %v247_v4, %v673_v7 }
  0xb8   :  { %v259_v60 = vpop.xlane.xlu1 %258 }
  0xb9   :  { %v401_v63 = vrot.slane %v259_v60, %v673_v7 }
  0xba   :  { %v250_v61 = vpop.xlane.xlu0 %249 }
  0xbb   :  { %v381_v62 = vrot.slane %v250_v61, %v763_v38 }
  0xbc   :  { %v262_v3 = vpop.xlane.xlu1 %261 }
  0xbd   :  { %v383_v48 = vsel %vm382_vm5, %v381_v62, %v376_v35  ;;  %v405_v0 = vrot.slane %v262_v3, %v763_v38 }
  0xbe   :  { %v253_v1 = vpop.xlane.xlu0 %252 }
  0xbf   :  { %v406_v2 = vsel %vm382_vm5, %v405_v0, %v401_v63  ;;  %v388_v5 = vrot.slane %v253_v1, %v771_v46 }
  0xc0   :  { %v265_v9 = vpop.xlane.xlu1 %264 }
  0xc1   :  { %v390_v11 = vsel %vm389_vm6, %v388_v5, %v383_v48  ;;  %v410_v12 = vrot.slane %v265_v9, %v771_v46 }
  0xc2   :  { %v256_v13 = vpop.xlane.xlu0 %255 }
  0xc3   :  { %v411_v14 = vsel %vm389_vm6, %v410_v12, %v406_v2  ;;  %v395_v15 = vrot.slane %v256_v13, %v781_v55 }
  0xc4   :  { %v274_v16 = vpop.xlane.xlu1 %273 }
  0xc5   :  { %v397_v17 = vsel %vm396_vm7, %v395_v15, %v390_v11  ;;  %v424_v20 = vrot.slane %v274_v16, %v763_v38 }
  0xc6   :  { %v271_v18 = vpop.xlane.xlu0 %270 }
  0xc7   :  { %v420_v22 = vrot.slane %v271_v18, %v673_v7 }
  0xc8   :  { %v268_v23 = vpop.xlane.xlu1 %267 }
  0xc9   :  { %v425_v24 = vsel %vm382_vm5, %v424_v20, %v420_v22  ;;  %v415_v25 = vrot.slane %v268_v23, %v781_v55 }
  0xca   :  { %v277_v26 = vpop.xlane.xlu0 %276 }
  0xcb   :  { %v416_v27 = vsel %vm396_vm7, %v415_v25, %v411_v14  ;;  %v429_v28 = vrot.slane %v277_v26, %v771_v46 }
  0xcc   :  { %v532_v29 = vsel %vm531_vm8, %v416_v27, %v397_v17  ;;  %v283_v30 = vpop.xlane.xlu1 %282 }
  0xcd   :  { %v430_v31 = vsel %vm389_vm6, %v429_v28, %v425_v24  ;;  %v439_v33 = vrot.slane %v283_v30, %v673_v7 }
  0xce   :  { %v286_v32 = vpop.xlane.xlu0 %285 }
  0xcf   :  { %v443_v34 = vrot.slane %v286_v32, %v763_v38 }
  0xd0   :  { %v280_v36 = vpop.xlane.xlu1 %279 }
  0xd1   :  { %v444_v37 = vsel %vm382_vm5, %v443_v34, %v439_v33  ;;  %v434_v39 = vrot.slane %v280_v36, %v781_v55 }
  0xd2   :  { %v289_v40 = vpop.xlane.xlu0 %288 }
  0xd3   :  { %v435_v41 = vsel %vm396_vm7, %v434_v39, %v430_v31  ;;  %v448_v10 = vrot.slane %v289_v40, %v771_v46 }
  0xd4   :  { %v534_v42 = vsel %vm533_vm9, %v435_v41, %v532_v29  ;;  %v295_v43 = vpop.xlane.xlu1 %294 }
  0xd5   :  { %v449_v44 = vsel %vm389_vm6, %v448_v10, %v444_v37  ;;  %v458_v6 = vrot.slane %v295_v43, %v673_v7 }
  0xd6   :  { %v298_v45 = vpop.xlane.xlu0 %297 }
  0xd7   :  { %v462_v47 = vrot.slane %v298_v45, %v763_v38 }
  0xd8   :  { %v292_v49 = vpop.xlane.xlu1 %291 }
  0xd9   :  { %v463_v50 = vsel %vm382_vm5, %v462_v47, %v458_v6  ;;  %v453_v51 = vrot.slane %v292_v49, %v781_v55 }
  0xda   :  { %v301_v52 = vpop.xlane.xlu0 %300 }
  0xdb   :  { %v454_v53 = vsel %vm396_vm7, %v453_v51, %v449_v44  ;;  %v467_v54 = vrot.slane %v301_v52, %v771_v46 }
  0xdc   :  { %v536_v56 = vsel %vm535_vm10, %v454_v53, %v534_v42  ;;  %v307_v19 = vpop.xlane.xlu1 %306 }
  0xdd   :  { %v468_v57 = vsel %vm389_vm6, %v467_v54, %v463_v50  ;;  %v477_v58 = vrot.slane %v307_v19, %v673_v7 }
  0xde   :  { %v310_v21 = vpop.xlane.xlu0 %309 }
  0xdf   :  { %v481_v59 = vrot.slane %v310_v21, %v763_v38 }
  0xe0   :  { %v304_v4 = vpop.xlane.xlu1 %303 }
  0xe1   :  { %v482_v60 = vsel %vm382_vm5, %v481_v59, %v477_v58  ;;  %v472_v61 = vrot.slane %v304_v4, %v781_v55 }
  0xe2   :  { %v313_v35 = vpop.xlane.xlu0 %312 }
  0xe3   :  { %v473_v62 = vsel %vm396_vm7, %v472_v61, %v468_v57  ;;  %v486_v3 = vrot.slane %v313_v35, %v771_v46 }
  0xe4   :  { %v538_v63 = vsel %vm537_vm11, %v473_v62, %v536_v56  ;;  %v319_v48 = vpop.xlane.xlu1 %318 }
  0xe5   :  { %v487_v0 = vsel %vm389_vm6, %v486_v3, %v482_v60  ;;  %v496_v2 = vrot.slane %v319_v48, %v673_v7 }
  0xe6   :  { %v322_v1 = vpop.xlane.xlu0 %321 }
  0xe7   :  { %v500_v5 = vrot.slane %v322_v1, %v763_v38 }
  0xe8   :  { %v316_v9 = vpop.xlane.xlu1 %315 }
  0xe9   :  { %v501_v11 = vsel %vm382_vm5, %v500_v5, %v496_v2  ;;  %v491_v12 = vrot.slane %v316_v9, %v781_v55 }
  0xea   :  { %v325_v13 = vpop.xlane.xlu0 %324 }
  0xeb   :  { %v492_v14 = vsel %vm396_vm7, %v491_v12, %v487_v0  ;;  %v505_v15 = vrot.slane %v325_v13, %v771_v46 }
  0xec   :  { %v540_v16 = vsel %vm539_vm12, %v492_v14, %v538_v63  ;;  %v331_v17 = vpop.xlane.xlu1 %330 }
  0xed   :  { %v506_v18 = vsel %vm389_vm6, %v505_v15, %v501_v11  ;;  %v515_v22 = vrot.slane %v331_v17, %v673_v7 }
  0xee   :  { %v334_v20 = vpop.xlane.xlu0 %333 }
  0xef   :  { %v519_v23 = vrot.slane %v334_v20, %v763_v38 }
  0xf0   :  { %v328_v24 = vpop.xlane.xlu1 %327 }
  0xf1   :  { %v520_v25 = vsel %vm382_vm5, %v519_v23, %v515_v22  ;;  %v510_v26 = vrot.slane %v328_v24, %v781_v55 }
  0xf2   :  { %v337_v27 = vpop.xlane.xlu0 %336 }
  0xf3   :  { %v511_v28 = vsel %vm396_vm7, %v510_v26, %v506_v18  ;;  %v524_v29 = vrot.slane %v337_v27, %v771_v46 }
  0xf4   :  { %v542_v30 = vsel %vm541_vm13, %v511_v28, %v540_v16  ;;  %v340_v31 = vpop.xlane.xlu1 %339 }
  0xf5   :  { %v525_v32 = vsel %vm389_vm6, %v524_v29, %v520_v25  ;;  %v529_v33 = vrot.slane %v340_v31, %v781_v55 }
  0xf7   :  { %v530_v7 = vsel %vm396_vm7, %v529_v33, %v525_v32 }
  0xf8   :  { %v544_v38 = vsel %vm543_vm14, %v530_v7, %v542_v30 }
  0xf9   :  { %v546_v34 = vadd.f32 %v544_v38, %v675_v8 }
  0xfb   :  { %547 = vst.msk [vmem:[#allocation7] sm:$0xff] %vm244_vm1, %v546_v34 }
  0xfc   :  { %622 = shalt.err (!%p619_p0)
}
  0xfd   :  { %557 = dma.vmem_to_hbm [thread:$0]  %s555_s1, 128, %s897_s2, [#allocation4]  }
  0xfe   :  { %635 = dma.done.wait [#allocation4], 128  }
  0xff   :  { %636 = vsyncadd [#allocation4], 4294967168 }
 0x100   :  { %561 = vsyncpa [#allocation3], 1 }
 0x101   :  { %562 = vsyncpa [#allocation6], 1 }
 0x102   :  { %563 = vsyncpa [#allocation4], 1 }

</bundles_post_ra>
